<compile_context>
chip_gen: v6e
topology: v6e:2x2x1
jax: 0.10.0
libtpu: 0.0.40
codegen_flags: <defaults>
</compile_context>

<pallas_src>
import math
import functools

import jax
import jax.numpy as jnp
from jax import lax
from jax.experimental import pallas as pl
from jax.experimental.pallas import tpu as pltpu


def _sigmoid(x):
    # explicit form (exp + div) lowers cleanly in Mosaic; used in kernel & reference
    return 1.0 / (1.0 + jnp.exp(-x))


# ---------------------------------------------------------------------------
# Kernel 1: generic projection  o = x @ Wt + b   (Wt already transposed)
# Row-tiled so the activation DMA pipelines behind the MXU and the row axis
# can shard across TensorCores; weight/bias blocks are grid-invariant.
# ---------------------------------------------------------------------------
def _linear_kernel(x_ref, wt_ref, b_ref, o_ref):
    acc = jnp.dot(x_ref[...], wt_ref[...], preferred_element_type=jnp.float32)
    o_ref[...] = (acc + b_ref[...]).astype(o_ref.dtype)


def linear_pallas(x2d, wt, b, *, tm_max=256):
    """x2d: (N, Din); wt: (Din, Dout) pre-transposed; b: (Dout,)."""
    N, Din = x2d.shape
    Dout = wt.shape[1]
    tm = N if N <= tm_max else tm_max       # keep 2*(tm*(Din+Dout)) + Din*Dout small (v7x 64MiB VMEM)
    b2 = b.reshape(1, Dout)
    return pl.pallas_call(
        _linear_kernel,
        out_shape=jax.ShapeDtypeStruct((N, Dout), x2d.dtype),
        grid=(pl.cdiv(N, tm),),
        in_specs=[
            pl.BlockSpec((tm, Din), lambda i: (i, 0)),
            pl.BlockSpec((Din, Dout), lambda i: (0, 0)),
            pl.BlockSpec((1, Dout), lambda i: (0, 0)),
        ],
        out_specs=pl.BlockSpec((tm, Dout), lambda i: (i, 0)),
        compiler_params=pltpu.CompilerParams(dimension_semantics=("parallel",)),
    )(x2d, wt, b2)


# ---------------------------------------------------------------------------
# Kernel 2: LSTM recurrence over time (single layer).
# xg = precomputed input gates (B, T, 4H) (x @ W_ih^T + b_ih + b_hh).
# Grid iterates sequentially over time-chunks; h/c live in VMEM scratch.
# ---------------------------------------------------------------------------
def _lstm_chunk_kernel(xg_ref, whh_ref, y_ref, hlast_ref, h_sc, c_sc, *, hidden, chunk):
    H = hidden

    @pl.when(pl.program_id(0) == 0)
    def _():
        h_sc[...] = jnp.zeros_like(h_sc)
        c_sc[...] = jnp.zeros_like(c_sc)

    for i in range(chunk):                              # static unroll within the chunk
        gates = xg_ref[:, i, :].astype(jnp.float32) + jnp.dot(
            h_sc[...], whh_ref[...], preferred_element_type=jnp.float32)   # (B, 4H)
        i_g = _sigmoid(gates[:, 0:H])
        f_g = _sigmoid(gates[:, H:2 * H])
        g_g = jnp.tanh(gates[:, 2 * H:3 * H])
        o_g = _sigmoid(gates[:, 3 * H:4 * H])
        c = f_g * c_sc[...] + i_g * g_g
        h = o_g * jnp.tanh(c)
        c_sc[...] = c
        h_sc[...] = h
        y_ref[:, i, :] = h.astype(y_ref.dtype)

    hlast_ref[...] = h_sc[...].astype(hlast_ref.dtype)  # final writeback holds h_T


def lstm_recurrence_pallas(xg, whh_t):
    """xg: (B, T, 4H); whh_t: (H, 4H). Returns (y (B,T,H), h_last (B,H))."""
    B, T, G = xg.shape
    H = whh_t.shape[0]
    # time-chunk must divide T; keeps the unrolled inner loop short while pipelining xg DMA
    if T <= 16:
        tt = T
    elif T % 16 == 0:
        tt = 16
    elif T % 8 == 0:
        tt = 8
    else:
        tt = T  # TODO(synk): ragged T would need a masked final chunk; whole-sequence fallback here.
    kernel = functools.partial(_lstm_chunk_kernel, hidden=H, chunk=tt)
    y, h_last = pl.pallas_call(
        kernel,
        out_shape=(jax.ShapeDtypeStruct((B, T, H), xg.dtype),
                   jax.ShapeDtypeStruct((B, H), xg.dtype)),
        grid=(T // tt,),
        in_specs=[
            pl.BlockSpec((B, tt, G), lambda s: (0, s, 0)),
            pl.BlockSpec((H, G), lambda s: (0, 0)),
        ],
        out_specs=(
            pl.BlockSpec((B, tt, H), lambda s: (0, s, 0)),
            pl.BlockSpec((B, H), lambda s: (0, 0)),
        ),
        scratch_shapes=[pltpu.VMEM((B, H), jnp.float32),
                        pltpu.VMEM((B, H), jnp.float32)],
        compiler_params=pltpu.CompilerParams(dimension_semantics=("arbitrary",)),
    )(xg, whh_t)
    return y, h_last


# ---------------------------------------------------------------------------
# Kernel 3: multi-head attention, all heads of one batch element per grid step.
# q:  (B, Lq, H)   (Lq = num_layers; layout already matches torch's .view mixing)
# kv: (B, T, 2H)   (fused K|V projection output, K = cols [:H], V = cols [H:])
# outputs: ctx (B, Lq, H) in merged layout, weights (B, nh, Lq, T)
# ---------------------------------------------------------------------------
def _attn_kernel(q_ref, kv_ref, ctx_ref, w_ref, *, nh, hd, scale):
    H = nh * hd
    q = q_ref[0].astype(jnp.float32) * scale     # scale folded into q (Lq*H muls, not Lq*T)
    kvb = kv_ref[0].astype(jnp.float32)          # (T, 2H)
    k = kvb[:, :H]
    v = kvb[:, H:]
    for h in range(nh):                          # static unroll over heads
        lo = h * hd
        qh = q[:, lo:lo + hd]                    # (Lq, hd)
        kh = k[:, lo:lo + hd]                    # (T, hd)
        vh = v[:, lo:lo + hd]
        # contraction on the last axis of both operands -> no transpose / XLU relayout
        s = lax.dot_general(qh, kh, (((1,), (1,)), ((), ())),
                            preferred_element_type=jnp.float32)            # (Lq, T)
        m = jnp.max(s, axis=-1, keepdims=True)
        e = jnp.exp(s - m)
        inv = pl.reciprocal(jnp.sum(e, axis=-1, keepdims=True), approx=True)
        w = e * inv
        # TODO(synk): (Lq, T) weight stores are lane-masked when T < 128; unavoidable
        # without padding since the module must return (B, nh, Lq, T) weights.
        w_ref[0, h] = w.astype(w_ref.dtype)
        ctx_ref[0, :, lo:lo + hd] = jnp.dot(
            w, vh, preferred_element_type=jnp.float32).astype(ctx_ref.dtype)


def attention_pallas(q, kv, num_heads, head_size):
    B, Lq, H = q.shape
    T = kv.shape[1]
    kernel = functools.partial(_attn_kernel, nh=num_heads, hd=head_size,
                               scale=1.0 / math.sqrt(head_size))
    ctx, w = pl.pallas_call(
        kernel,
        out_shape=(jax.ShapeDtypeStruct((B, Lq, H), q.dtype),
                   jax.ShapeDtypeStruct((B, num_heads, Lq, T), q.dtype)),
        grid=(B,),
        in_specs=[
            pl.BlockSpec((1, Lq, H), lambda b: (b, 0, 0)),
            pl.BlockSpec((1, T, 2 * H), lambda b: (b, 0, 0)),
        ],
        out_specs=(
            pl.BlockSpec((1, Lq, H), lambda b: (b, 0, 0)),
            pl.BlockSpec((1, num_heads, Lq, T), lambda b: (b, 0, 0, 0)),
        ),
        compiler_params=pltpu.CompilerParams(dimension_semantics=("parallel",)),
    )(q, kv)
    return ctx, w


# ---------------------------------------------------------------------------
# Module wrapper
# ---------------------------------------------------------------------------
class LSTMWithMultiheadAttentionPallas:
    def __init__(self, input_size, hidden_size, num_layers, num_heads, key):
        assert hidden_size % num_heads == 0
        self.input_size = input_size
        self.hidden_size = hidden_size
        self.num_layers = num_layers
        self.num_heads = num_heads
        self.head_size = hidden_size // num_heads

        ks = list(jax.random.split(key, 4 * num_layers + 6))

        def u(shape, bound):
            return jax.random.uniform(ks.pop(0), shape, jnp.float32, -bound, bound)

        # LSTM params (pre-transposed; b_ih + b_hh fused into one bias)
        bl = 1.0 / math.sqrt(hidden_size)
        self.lstm_w_ih_t, self.lstm_w_hh_t, self.lstm_bias = [], [], []
        for layer in range(num_layers):
            din = input_size if layer == 0 else hidden_size
            self.lstm_w_ih_t.append(u((din, 4 * hidden_size), bl))
            self.lstm_w_hh_t.append(u((hidden_size, 4 * hidden_size), bl))
            self.lstm_bias.append(u((4 * hidden_size,), bl) + u((4 * hidden_size,), bl))

        # Attention params: Q separate (different input), K|V fused into (H, 2H)
        ba = 1.0 / math.sqrt(hidden_size)
        self.w_q_t = u((hidden_size, hidden_size), ba)
        self.b_q = u((hidden_size,), ba)
        w_k_t = u((hidden_size, hidden_size), ba)
        b_k = u((hidden_size,), ba)
        w_v_t = u((hidden_size, hidden_size), ba)
        b_v = u((hidden_size,), ba)
        self.w_kv_t = jnp.concatenate([w_k_t, w_v_t], axis=1)   # (H, 2H)
        self.b_kv = jnp.concatenate([b_k, b_v], axis=0)         # (2H,)

    def __call__(self, x, mask=None):
        if mask is not None:
            # TODO(synk): masked_fill path (mask != None) not exercised by the reference forward.
            raise NotImplementedError("mask is not supported in this Pallas port")

        B, T, _ = x.shape
        H, L = self.hidden_size, self.num_layers

        # ---- LSTM encoder ----
        layer_in = x
        hiddens = []
        for layer in range(L):
            din = layer_in.shape[-1]
            xg = linear_pallas(layer_in.reshape(B * T, din),
                               self.lstm_w_ih_t[layer], self.lstm_bias[layer])
            xg = xg.reshape(B, T, 4 * H)                         # free row-major reshape
            y, h_last = lstm_recurrence_pallas(xg, self.lstm_w_hh_t[layer])
            layer_in = y
            hiddens.append(h_last)
            # TODO(synk): nn.LSTM inter-layer dropout (p=0.456) is training-only; omitted (eval forward).
        enc = layer_in                                           # (B, T, H) encoder_outputs
        hidden = jnp.stack(hiddens, axis=0)                      # (L, B, H)

        # ---- attention projections ----
        # Q: row-major reshape of (L, B, H) -> (B, L, H) replicates torch's .view(batch, -1, nh, hd)
        q = linear_pallas(hidden.reshape(L * B, H), self.w_q_t, self.b_q).reshape(B, L, H)
        kv = linear_pallas(enc.reshape(B * T, H), self.w_kv_t, self.b_kv).reshape(B, T, 2 * H)

        # ---- attention ----
        ctx, attn_w = attention_pallas(q, kv, self.num_heads, self.head_size)
        return ctx, attn_w


# ---------------------------------------------------------------------------
# Pure-JAX reference (mirrors the PyTorch forward) for verification
# ---------------------------------------------------------------------------
def reference_forward(mod, x):
    B, T, _ = x.shape
    H, L, nh, hd = mod.hidden_size, mod.num_layers, mod.num_heads, mod.head_size

    layer_in = x
    hiddens = []
    for layer in range(L):
        w_ih_t, w_hh_t, bias = mod.lstm_w_ih_t[layer], mod.lstm_w_hh_t[layer], mod.lstm_bias[layer]
        h = jnp.zeros((B, H), jnp.float32)
        c = jnp.zeros((B, H), jnp.float32)
        outs = []
        for t in range(T):
            gates = layer_in[:, t, :] @ w_ih_t + h @ w_hh_t + bias
            i_g = _sigmoid(gates[:, 0:H])
            f_g = _sigmoid(gates[:, H:2 * H])
            g_g = jnp.tanh(gates[:, 2 * H:3 * H])
            o_g = _sigmoid(gates[:, 3 * H:4 * H])
            c = f_g * c + i_g * g_g
            h = o_g * jnp.tanh(c)
            outs.append(h)
        layer_in = jnp.stack(outs, axis=1)
        hiddens.append(h)
    enc = layer_in                              # (B, T, H)
    hidden = jnp.stack(hiddens, axis=0)         # (L, B, H)

    Qp = hidden @ mod.w_q_t + mod.b_q           # (L, B, H)
    kvp = enc @ mod.w_kv_t + mod.b_kv           # (B, T, 2H)
    Kp, Vp = kvp[..., :H], kvp[..., H:]

    Q = jnp.transpose(Qp.reshape(B, -1, nh, hd), (0, 2, 1, 3))   # torch view mixing
    K = jnp.transpose(Kp.reshape(B, -1, nh, hd), (0, 2, 1, 3))
    V = jnp.transpose(Vp.reshape(B, -1, nh, hd), (0, 2, 1, 3))
    scores = jnp.einsum("bhqd,bhkd->bhqk", Q, K) / math.sqrt(hd)
    w = jax.nn.softmax(scores, axis=-1)
    ctx = jnp.einsum("bhqk,bhkd->bhqd", w, V)
    ctx = jnp.transpose(ctx, (0, 2, 1, 3)).reshape(B, -1, H)
    return ctx, w


if __name__ == "__main__":
    input_size, hidden_size, num_layers, num_heads = 16, 32, 2, 4
    batch, seq_len = 2, 8

    root = jax.random.PRNGKey(0)
    k_params, k_x = jax.random.split(root)

    mod = LSTMWithMultiheadAttentionPallas(input_size, hidden_size, num_layers,
                                           num_heads, k_params)
    x = jax.random.normal(k_x, (batch, seq_len, input_size), jnp.float32)

    context, attn_weights = mod(x)
    jax.block_until_ready((context, attn_weights))

    ref_ctx, ref_w = reference_forward(mod, x)
    assert context.shape == (batch, num_layers, hidden_size)
    assert attn_weights.shape == (batch, num_heads, num_layers, seq_len)
    # tolerance accounts for pl.reciprocal(approx=True) in the softmax denominator
    assert jnp.allclose(context, ref_ctx, atol=1e-2, rtol=1e-2)
    assert jnp.allclose(attn_weights, ref_w, atol=1e-2, rtol=1e-2)

    print("KERNEL_OK")
</pallas_src>

<mosaic_0001>
module attributes {stable_mosaic.version = 11 : i64} {
  func.func @_linear_kernel(%arg0: i32, %arg1: memref<16x16xf32, #tpu.memory_space<vmem>>, %arg2: memref<16x128xf32, #tpu.memory_space<vmem>>, %arg3: memref<1x128xf32, #tpu.memory_space<vmem>>, %arg4: memref<16x128xf32, #tpu.memory_space<vmem>>) attributes {dimension_semantics = [#tpu.dimension_semantics<parallel>], iteration_bounds = array<i64: 1>, scalar_prefetch = 0 : i64, scratch_operands = 0 : i64, tpu.core_type = #tpu.core_type<tc>, window_params = [{transform_indices = @transform_0, window_bounds = array<i64: 16, 16>}, {pipeline_mode = #tpu.pipeline_mode<synchronous>, transform_indices = @transform_1, window_bounds = array<i64: 16, 128>}, {pipeline_mode = #tpu.pipeline_mode<synchronous>, transform_indices = @transform_2, window_bounds = array<i64: 1, 128>}, {transform_indices = @transform_3, window_bounds = array<i64: 16, 128>}]} {
    %c0 = arith.constant 0 : index
    %c0_0 = arith.constant 0 : index
    %0 = vector.load %arg1[%c0, %c0_0] : memref<16x16xf32, #tpu.memory_space<vmem>>, vector<16x16xf32>
    %c0_1 = arith.constant 0 : index
    %c0_2 = arith.constant 0 : index
    %1 = vector.load %arg2[%c0_1, %c0_2] : memref<16x128xf32, #tpu.memory_space<vmem>>, vector<16x128xf32>
    %cst = arith.constant dense<0.000000e+00> : vector<16x128xf32>
    %2 = tpu.matmul %0, %1, %cst {dimension_numbers = #tpu.dot_dimension_numbers<[1], [0], [0], [1], [0, 0, 1, 1], [], []>} : vector<16x16xf32>, vector<16x128xf32>, vector<16x128xf32> -> vector<16x128xf32>
    %c0_3 = arith.constant 0 : index
    %c0_4 = arith.constant 0 : index
    %3 = vector.load %arg3[%c0_3, %c0_4] : memref<1x128xf32, #tpu.memory_space<vmem>>, vector<1x128xf32>
    %4 = vector.broadcast %3 : vector<1x128xf32> to vector<16x128xf32>
    %5 = arith.addf %2, %4 : vector<16x128xf32>
    %c0_5 = arith.constant 0 : index
    %c0_6 = arith.constant 0 : index
    %6 = vector.load %arg4[%c0_5, %c0_6] : memref<16x128xf32, #tpu.memory_space<vmem>>, vector<16x128xf32>
    tpu.vector_store %arg4[%c0_5, %c0_6], %5 {strides = array<i32>} : memref<16x128xf32, #tpu.memory_space<vmem>>, vector<16x128xf32>,
    return
  }
  func.func @transform_0(%arg0: i32) -> (i32, i32) {
    %c0_i32 = arith.constant 0 : i32
    %c0_i32_0 = arith.constant 0 : i32
    return %arg0, %c0_i32 : i32, i32
  }
  func.func @transform_1(%arg0: i32) -> (i32, i32) {
    %c0_i32 = arith.constant 0 : i32
    %c0_i32_0 = arith.constant 0 : i32
    %c0_i32_1 = arith.constant 0 : i32
    return %c0_i32, %c0_i32_0 : i32, i32
  }
  func.func @transform_2(%arg0: i32) -> (i32, i32) {
    %c0_i32 = arith.constant 0 : i32
    %c0_i32_0 = arith.constant 0 : i32
    %c0_i32_1 = arith.constant 0 : i32
    return %c0_i32, %c0_i32_0 : i32, i32
  }
  func.func @transform_3(%arg0: i32) -> (i32, i32) {
    %c0_i32 = arith.constant 0 : i32
    %c0_i32_0 = arith.constant 0 : i32
    return %arg0, %c0_i32 : i32, i32
  }
}

</mosaic_0001>

<bundles_post_ra>
// kernel: tpu_custom_call.1
= control target key start
LH: loop header
LB: loop body
LE: loop exit
PB: predicated region body
PF: predicated region fallthrough
CT: control target
= control target key end

     0   :  { %8 = vsyncpa [#allocation3], 0  ;;  %s287_s0 = inlined_call_operand.hbm [shape: f32[16,16], index: 0, kind: input, shape index: {}]   ;;  %s288_s1 = inlined_call_operand.hbm [shape: f32[16,128], index: 1, kind: input, shape index: {}]   ;;  %s289_s2 = inlined_call_operand.vmem [shape: f32[1,128], index: 2, kind: input, shape index: {}]   ;;  %s290_s3 = inlined_call_operand.hbm [shape: f32[16,128], index: 3, kind: output, shape index: {}]  }
   0x1   :  { %9 = vsyncpa [#allocation6], 0 }
   0x2   :  { %10 = vsyncpa [#allocation4], 0  ;;  %s241_s12 = smov [#allocation2]  }
   0x3   :  { %s16_s13 = sshll.u32 %s241_s12, 4  ;;  %s17_s13 = int_to_ptr.vmem [resolvable:$true] %s16_s13 }
   0x4   :  { %s183_s14 = scalar_lea.vmem %s17_s13, 256  ;;  %p188_p1 = scmp.lt.s32.totalorder %s17_s13, %s17_s13 }
   0x5   :  { %p184_p0 = scmp.ne.s32.totalorder %s17_s13, %s183_s14  ;;  %p189_p2 = scmp.lt.s32.totalorder %s183_s14, %s183_s14 }
   0x7   :  { %p190_p3 = por %p189_p2, %p188_p1 }
   0x9   :  { %p191_p4 = pnand %p190_p3, %p184_p0 }
   0xb   :  { %194 = shalt.err (!%p191_p4)
}
   0xc   :  { %s242_s15 = smov 128   ;;  %s243_s16 = smov 8  }
   0xd   :  { %22 = dma.hbm_to_vmem [thread:$0]  %s287_s0, 256, %s17_s13, [#allocation3], %s242_s15, %s242_s15, %s243_s16  }
   0xe   :  { %s244_s19 = smov [#allocation5]  }
   0xf   :  { %s28_s20 = sshll.u32 %s244_s19, 4  ;;  %s29_s20 = int_to_ptr.vmem [resolvable:$true] %s28_s20 }
  0x10   :  { %s203_s21 = scalar_lea.vmem %s29_s20, 256  ;;  %p208_p6 = scmp.lt.s32.totalorder %s29_s20, %s29_s20 }
  0x11   :  { %p204_p5 = scmp.ne.s32.totalorder %s29_s20, %s203_s21  ;;  %p209_p7 = scmp.lt.s32.totalorder %s203_s21, %s203_s21 }
  0x13   :  { %p210_p8 = por %p209_p7, %p208_p6 }
  0x15   :  { %p211_p9 = pnand %p210_p8, %p204_p5 }
  0x17   :  { %214 = shalt.err (!%p211_p9)
}
  0x18   :  { %34 = dma.hbm_to_vmem [thread:$0]  %s288_s1, 256, %s29_s20, [#allocation6], %s242_s15, %s242_s15, %s243_s16  }
  0x19   :  { %235 = dma.done.wait [#allocation3], 256  }
  0x1a   :  { %236 = vsyncadd [#allocation3], 4294967040 }
  0x1b   :  { %237 = dma.done.wait [#allocation6], 256  }
  0x1c   :  { %238 = vsyncadd [#allocation6], 4294967040  ;;  %vm54_vm0 = vcmask 130048   ;;  %v46_v0 = vld [vmem:[#allocation5 + $0x8] sm:$0xff]  ;;  %v45_v1 = vld [vmem:[#allocation5] sm:$0xff]  ;;  %s245_s1 = smov [#allocation7]  }
  0x1d   :  { %v43_v2 = vld [vmem:[#allocation2] sm:$0xff]  ;;  %163 = vmatprep.subr.mxu0 %v46_v0  ;;  %v44_v3 = vld [vmem:[#allocation2 + $0x8] sm:$0xff]  ;;  %s143_s25 = sshll.u32 %s245_s1, 4  ;;  %s144_s25 = int_to_ptr.vmem [resolvable:$true] %s143_s25 }
  0x1e   :  { %167 = vmatprep.mubr.msk.f32.mxu0 %vm54_vm0, %v43_v2  ;;  %164 = vmatpush3.msra.mxu0 %v46_v0  ;;  %v156_v4 = vld [vmem:[%s289_s2] ss:$0 sm:$0xff]  ;;  %s215_s26 = scalar_lea.vmem %s144_s25, 256  ;;  %p220_p11 = scmp.lt.s32.totalorder %s144_s25, %s144_s25 }
  0x1f   :  { %165 = vmatprep.subr.mxu0 %v45_v1  ;;  %p216_p10 = scmp.ne.s32.totalorder %s144_s25, %s215_s26  ;;  %p221_p12 = scmp.lt.s32.totalorder %s215_s26, %s215_s26 }
  0x20   :  { %166 = vmatpush3.msra.mxu0 %v45_v1 }
  0x21   :  { %168 = vmatmul.mubr.msk.f32.vlgmr.msra.gmra.mxu0 %vm54_vm0, %v44_v3  ;;  %p222_p13 = por %p221_p12, %p220_p11 }
  0x23   :  { %p223_p0 = pnand %p222_p13, %p216_p10 }
  0xe1   :  { %v169_v5 = vpop.f32.mrf.mxu0 }
  0xe2   :  { %v133_v6 = vadd.f32 %v169_v5, %v156_v4 }
  0xe3   :  { %v127_v7 = vpop.f32.mrf.mxu0 }
  0xe4   :  { %137 = vst [vmem:[#allocation7 + $0x8] sm:$0xff] %v133_v6  ;;  %v128_v8 = vadd.f32 %v156_v4, %v127_v7 }
  0xe6   :  { %136 = vst [vmem:[#allocation7] sm:$0xff] %v128_v8 }
  0xe7   :  { %226 = shalt.err (!%p223_p0)
}
  0xe8   :  { %149 = dma.vmem_to_hbm [thread:$0]  %s144_s25, 256, %s290_s3, [#allocation4], %s242_s15, %s242_s15, %s243_s16  }
  0xe9   :  { %239 = dma.done.wait [#allocation4], 256  }
  0xea   :  { %240 = vsyncadd [#allocation4], 4294967040 }
  0xeb   :  { %153 = vsyncpa [#allocation3], 1 }
  0xec   :  { %154 = vsyncpa [#allocation6], 1 }
  0xed   :  { %155 = vsyncpa [#allocation4], 1 }

</bundles_post_ra>
